<compile_context>
chip_gen: v7x
topology: tpu7x:2x2x1
jax: 0.10.0
libtpu: 0.0.40
codegen_flags: <defaults>
</compile_context>

<pallas_src>
import functools

import jax
import jax.numpy as jnp
from jax import lax
from jax.experimental import pallas as pl
from jax.experimental.pallas import tpu as pltpu

KMEANS_NUM = 8      # `kmeansNum` global from the original script
N_ITER = 10         # fixed Lloyd iterations (sklearn iterates to convergence)


def _round_up(x, m):
    return ((x + m - 1) // m) * m


# --------------------------------------------------------------------------
# Resident path: whole transposed dataset lives in VMEM, Lloyd loop in-kernel.
# --------------------------------------------------------------------------
def _kmeans_resident_kernel(xat_ref, c0_ref, out_ref, *, n_iter):
    """xat_ref: (D+1, N) f32 (row D = 1 for real points, 0 for pad lanes).
    c0_ref:  (K, D+1) f32 initial centroids (last column 0).
    out_ref: (K, D) f32 cluster centers."""
    d_aug, n = xat_ref.shape
    d = d_aug - 1
    k = c0_ref.shape[0]

    xat = xat_ref[...].astype(jnp.float32)                 # read once, stays in VMEM
    kiota = lax.broadcasted_iota(jnp.int32, (k, n), 0)     # hoisted out of the loop
    col = lax.broadcasted_iota(jnp.int32, (k, d_aug), 1)

    def body(_, c):
        # Squared-distance surrogate in lane-dense (K, N) layout.
        xc = lax.dot_general(c, xat, (((1,), (0,)), ((), ())),
                             preferred_element_type=jnp.float32)       # (K, N) MXU
        c2 = 0.5 * jnp.sum(c * c, axis=-1, keepdims=True)              # (K, 1)
        dist = c2 - xc                                                 # (K, N)

        # argmin over clusters (sublane axis), ties -> lowest index.
        min_d = jnp.min(dist, axis=0, keepdims=True)
        idx = jnp.min(jnp.where(dist <= min_d, kiota, k), axis=0, keepdims=True)
        onehot = (kiota == idx).astype(jnp.float32)                    # (K, N)

        # (D+1, K): per-cluster feature sums; last row = counts.
        # Pad lanes are all-zero in xat, so they contribute nothing.
        acc_t = lax.dot_general(xat, onehot, (((1,), (1,)), ((), ())),
                                preferred_element_type=jnp.float32)
        acc = acc_t.T                                                  # tiny (K, D+1)
        counts = acc[:, d:d_aug]                                       # (K, 1)
        new_c = jnp.where(counts > 0.0, acc / jnp.maximum(counts, 1.0), c)
        # Keep the augmentation column exactly 0 so it never biases distances.
        return jnp.where(col >= d, 0.0, new_c)

    c_final = lax.fori_loop(0, n_iter, body, c0_ref[...].astype(jnp.float32))
    out_ref[...] = c_final[:, 0:d].astype(out_ref.dtype)


# --------------------------------------------------------------------------
# Streaming path: grid = (n_iter, N-tiles); resident centroid + accumulator.
# --------------------------------------------------------------------------
def _kmeans_stream_kernel(xat_ref, c0_ref, out_ref, c_sc, c2_sc, acct_sc):
    it = pl.program_id(0)
    t = pl.program_id(1)
    last_it = pl.num_programs(0) - 1
    last_t = pl.num_programs(1) - 1

    k, d_aug = c_sc.shape
    d = d_aug - 1
    tn = xat_ref.shape[1]

    # One-time centroid init.
    @pl.when((it == 0) & (t == 0))
    def _():
        c_sc[...] = c0_ref[...].astype(jnp.float32)

    # Start of every iteration: zero the accumulator, hoist 0.5*||c||^2.
    @pl.when(t == 0)
    def _():
        acct_sc[...] = jnp.zeros_like(acct_sc)
        c = c_sc[...]
        c2_sc[...] = 0.5 * jnp.sum(c * c, axis=-1, keepdims=True)

    xat = xat_ref[...].astype(jnp.float32)          # (D+1, TN), lane-dense
    c = c_sc[...]                                   # (K, D+1)

    xc = lax.dot_general(c, xat, (((1,), (0,)), ((), ())),
                         preferred_element_type=jnp.float32)           # (K, TN)
    dist = c2_sc[...] - xc                                             # (K, TN)

    kiota = lax.broadcasted_iota(jnp.int32, (k, tn), 0)
    min_d = jnp.min(dist, axis=0, keepdims=True)
    idx = jnp.min(jnp.where(dist <= min_d, kiota, k), axis=0, keepdims=True)
    onehot = (kiota == idx).astype(jnp.float32)                        # (K, TN)

    # Per-cluster sums + counts, accumulated transposed (D+1, K).
    acct_sc[...] += lax.dot_general(xat, onehot, (((1,), (1,)), ((), ())),
                                    preferred_element_type=jnp.float32)

    # End of an iteration: recompute centroids from the accumulator.
    @pl.when(t == last_t)
    def _():
        acc = acct_sc[...].T                                           # tiny (K, D+1)
        counts = acc[:, d:d_aug]
        new_c = jnp.where(counts > 0.0, acc / jnp.maximum(counts, 1.0), c_sc[...])
        col = lax.broadcasted_iota(jnp.int32, new_c.shape, 1)
        c_sc[...] = jnp.where(col >= d, 0.0, new_c)

    # Write the result once, after the final iteration.
    @pl.when((it == last_it) & (t == last_t))
    def _():
        out_ref[...] = c_sc[...][:, 0:d].astype(out_ref.dtype)


# --------------------------------------------------------------------------
# Planning: generation-aware VMEM budget, residency decision, tile size.
# --------------------------------------------------------------------------
def _vmem_capacity_bytes():
    try:
        cap = int(pltpu.get_tpu_info().vmem_capacity_bytes)
        if cap > 0:
            return cap
    except Exception:
        pass
    return 64 * 1024 * 1024   # conservative fallback (v7x per-core VMEM)


def _plan(n, d_aug, cap_bytes):
    """Returns (resident, tile_n, n_pad, vmem_limit_bytes) using padded row
    bytes (sublane padding of D+1) plus the (K, N) f32 intermediates."""
    budget = int(cap_bytes * 0.60)        # usable for x buffers + intermediates
    vmem_limit = int(cap_bytes * 0.90)

    x_rows = _round_up(d_aug, 8)          # padded sublanes of the (D+1, N) buffer
    inter_bytes = 6 * 8 * 4               # ~6 live (K=8, N) f32 intermediates / lane
    bytes_per_point = 2 * x_rows * 4 + inter_bytes   # x buffer (+copy / double-buf)

    n_pad128 = _round_up(max(n, 128), 128)
    if n_pad128 * bytes_per_point <= budget:
        return True, n_pad128, n_pad128, vmem_limit

    # Streaming: large lane tiles (amortize ~0.35 us/step), multiple of 128.
    tile_n = budget // bytes_per_point
    tile_n = max(128, min(32768, (tile_n // 128) * 128))
    n_pad = _round_up(n, tile_n)
    return False, tile_n, n_pad, vmem_limit


@functools.partial(jax.jit, static_argnames=("n_clusters", "n_iter"))
def kmeans_forward(x, n_clusters=KMEANS_NUM, n_iter=N_ITER):
    """Equivalent of kmeans.forward(x): returns cluster centers [K, D] (f32)."""
    # TODO(synk): sklearn's k-means++ init with random_state=0, n_init restarts,
    # tol-based stopping and empty-cluster relocation are not replicated; we
    # seed with the first K points and run a fixed number of Lloyd iterations.
    x = x.astype(jnp.float32)
    n, d = x.shape
    k = n_clusters
    d_aug = d + 1
    if n < k:
        raise ValueError(f"kmeans needs at least n_clusters={k} points, got {n}")

    cap = _vmem_capacity_bytes()
    resident, tile_n, n_pad, vmem_limit = _plan(n, d_aug, cap)

    # Transposed, lane-dense layout (D+1, N): row D is 1 for real points and 0
    # for padded lanes, so padded lanes contribute nothing to sums or counts.
    xat = jnp.concatenate([x.T, jnp.ones((1, n), jnp.float32)], axis=0)
    if n_pad > n:
        xat = jnp.pad(xat, ((0, 0), (0, n_pad - n)))

    c0 = jnp.concatenate([x[:k, :], jnp.zeros((k, 1), jnp.float32)], axis=1)

    if resident:
        # Whole dataset is VMEM-resident: x is read from HBM exactly once and
        # the Lloyd loop runs inside a single kernel invocation.
        return pl.pallas_call(
            functools.partial(_kmeans_resident_kernel, n_iter=n_iter),
            out_shape=jax.ShapeDtypeStruct((k, d), jnp.float32),
            compiler_params=pltpu.CompilerParams(vmem_limit_bytes=vmem_limit),
        )(xat, c0)

    # Streaming path for large N.
    # TODO(synk): optionally stream xat in bfloat16 to halve HBM traffic
    # (counts stay exact); kept f32 here to preserve exact f32 sums.
    num_tiles = n_pad // tile_n
    grid_spec = pltpu.PrefetchScalarGridSpec(
        num_scalar_prefetch=0,
        grid=(n_iter, num_tiles),                     # reduction axis (N tiles) last
        in_specs=[
            pl.BlockSpec((d_aug, tile_n), lambda it, t: (0, t)),   # x lane-tiles
            pl.BlockSpec((k, d_aug), lambda it, t: (0, 0)),        # init centroids
        ],
        out_specs=pl.BlockSpec((k, d), lambda it, t: (0, 0)),      # resident output
        scratch_shapes=[
            pltpu.VMEM((k, d_aug), jnp.float32),   # live centroids (persist)
            pltpu.VMEM((k, 1), jnp.float32),       # hoisted 0.5*||c||^2 per iteration
            pltpu.VMEM((d_aug, k), jnp.float32),   # per-iteration sumsT/counts acc
        ],
    )
    return pl.pallas_call(
        _kmeans_stream_kernel,
        out_shape=jax.ShapeDtypeStruct((k, d), jnp.float32),
        grid_spec=grid_spec,
        compiler_params=pltpu.CompilerParams(
            dimension_semantics=("arbitrary", "arbitrary"),
            vmem_limit_bytes=vmem_limit,
        ),
    )(xat, c0)


if __name__ == "__main__":
    key = jax.random.PRNGKey(0)
    # Small synthetic point set: N=64 points, D=32 features, K=8 clusters.
    x = jax.random.normal(key, (64, 32), dtype=jnp.float32)

    centers = kmeans_forward(x)
    centers = jax.block_until_ready(centers)

    assert centers.shape == (KMEANS_NUM, 32)
    assert bool(jnp.all(jnp.isfinite(centers)))
    print("KERNEL_OK")
</pallas_src>

<mosaic_0001>
module attributes {stable_mosaic.version = 11 : i64} {
  func.func @_kmeans_resident_kernel(%arg0: memref<33x128xf32, #tpu.memory_space<vmem>>, %arg1: memref<8x33xf32, #tpu.memory_space<vmem>>, %arg2: memref<8x32xf32, #tpu.memory_space<vmem>>) attributes {dimension_semantics = [], scalar_prefetch = 0 : i64, scratch_operands = 0 : i64, tpu.core_type = #tpu.core_type<tc>} {
    %c0 = arith.constant 0 : index
    %c0_0 = arith.constant 0 : index
    %0 = vector.load %arg0[%c0, %c0_0] : memref<33x128xf32, #tpu.memory_space<vmem>>, vector<33x128xf32>
    %1 = tpu.iota {dimensions = array<i32: 0>} : vector<8x128xi32>
    %2 = tpu.iota {dimensions = array<i32: 1>} : vector<8x33xi32>
    %c0_1 = arith.constant 0 : index
    %c0_2 = arith.constant 0 : index
    %3 = vector.load %arg1[%c0_1, %c0_2] : memref<8x33xf32, #tpu.memory_space<vmem>>, vector<8x33xf32>
    %c0_i32 = arith.constant 0 : i32
    %c10_i32 = arith.constant 10 : i32
    %4 = arith.addi %c0_i32, %c10_i32 : i32
    %c1_i32 = arith.constant 1 : i32
    %5 = scf.for %arg3 = %c0_i32 to %4 step %c1_i32 iter_args(%arg4 = %3) -> (vector<8x33xf32>)  : i32 {
      %cst = arith.constant dense<0.000000e+00> : vector<8x128xf32>
      %8 = tpu.matmul %arg4, %0, %cst {dimension_numbers = #tpu.dot_dimension_numbers<[1], [0], [0], [1], [0, 0, 1, 1], [], []>} : vector<8x33xf32>, vector<33x128xf32>, vector<8x128xf32> -> vector<8x128xf32>
      %9 = arith.mulf %arg4, %arg4 : vector<8x33xf32>
      %cst_5 = arith.constant dense<0.000000e+00> : vector<8xf32>
      %10 = vector.multi_reduction <add>, %9, %cst_5 [1] : vector<8x33xf32> to vector<8xf32>
      %11 = vector.shape_cast %10 : vector<8xf32> to vector<8x1xf32>
      %cst_6 = arith.constant 5.000000e-01 : f32
      %12 = vector.broadcast %cst_6 : f32 to vector<8x1xf32>
      %13 = arith.mulf %12, %11 : vector<8x1xf32>
      %14 = vector.broadcast %13 : vector<8x1xf32> to vector<8x128xf32>
      %15 = arith.subf %14, %8 : vector<8x128xf32>
      %cst_7 = arith.constant dense<0x7F800000> : vector<128xf32>
      %16 = vector.multi_reduction <minimumf>, %15, %cst_7 [0] : vector<8x128xf32> to vector<128xf32>
      %17 = vector.shape_cast %16 : vector<128xf32> to vector<1x128xf32>
      %18 = vector.broadcast %17 : vector<1x128xf32> to vector<8x128xf32>
      %19 = arith.cmpf ole, %15, %18 : vector<8x128xf32>
      %c8_i32 = arith.constant 8 : i32
      %20 = vector.broadcast %c8_i32 : i32 to vector<8x128xi32>
      %21 = arith.select %19, %1, %20 : vector<8x128xi1>, vector<8x128xi32>
      %cst_8 = arith.constant dense<2147483647> : vector<128xi32>
      %22 = vector.multi_reduction <minsi>, %21, %cst_8 [0] : vector<8x128xi32> to vector<128xi32>
      %23 = vector.shape_cast %22 : vector<128xi32> to vector<1x128xi32>
      %24 = vector.broadcast %23 : vector<1x128xi32> to vector<8x128xi32>
      %25 = arith.cmpi eq, %1, %24 : vector<8x128xi32>
      %26 = arith.extui %25 : vector<8x128xi1> to vector<8x128xi32>
      %27 = arith.sitofp %26 : vector<8x128xi32> to vector<8x128xf32>
      %cst_9 = arith.constant dense<0.000000e+00> : vector<33x8xf32>
      %28 = tpu.matmul %0, %27, %cst_9 {dimension_numbers = #tpu.dot_dimension_numbers<[1], [1], [0], [0], [0, 0, 1, 0], [], []>} : vector<33x128xf32>, vector<8x128xf32>, vector<33x8xf32> -> vector<33x8xf32>
      %29 = tpu.transpose %28, [1, 0] : vector<33x8xf32> -> vector<8x33xf32>
      %30 = vector.extract_strided_slice %29 {offsets = [0, 32], sizes = [8, 1], strides = [1, 1]} : vector<8x33xf32> to vector<8x1xf32>
      %cst_10 = arith.constant 0.000000e+00 : f32
      %31 = vector.broadcast %cst_10 : f32 to vector<8x1xf32>
      %32 = arith.cmpf ogt, %30, %31 : vector<8x1xf32>
      %cst_11 = arith.constant 1.000000e+00 : f32
      %33 = vector.broadcast %cst_11 : f32 to vector<8x1xf32>
      %34 = arith.maximumf %30, %33 : vector<8x1xf32>
      %35 = vector.broadcast %34 : vector<8x1xf32> to vector<8x33xf32>
      %36 = arith.divf %29, %35 : vector<8x33xf32>
      %37 = vector.shape_cast %32 : vector<8x1xi1> to vector<8x1xi1>
      %38 = vector.broadcast %37 : vector<8x1xi1> to vector<8x33xi1>
      %39 = arith.select %38, %36, %arg4 : vector<8x33xi1>, vector<8x33xf32>
      %c32_i32 = arith.constant 32 : i32
      %40 = vector.broadcast %c32_i32 : i32 to vector<8x33xi32>
      %41 = arith.cmpi sge, %2, %40 : vector<8x33xi32>
      %cst_12 = arith.constant 0.000000e+00 : f32
      %42 = vector.broadcast %cst_12 : f32 to vector<8x33xf32>
      %43 = arith.select %41, %42, %39 : vector<8x33xi1>, vector<8x33xf32>
      scf.yield %43 : vector<8x33xf32>
    }
    %6 = vector.extract_strided_slice %5 {offsets = [0, 0], sizes = [8, 32], strides = [1, 1]} : vector<8x33xf32> to vector<8x32xf32>
    %c0_3 = arith.constant 0 : index
    %c0_4 = arith.constant 0 : index
    %7 = vector.load %arg2[%c0_3, %c0_4] : memref<8x32xf32, #tpu.memory_space<vmem>>, vector<8x32xf32>
    tpu.vector_store %arg2[%c0_3, %c0_4], %6 {strides = array<i32>} : memref<8x32xf32, #tpu.memory_space<vmem>>, vector<8x32xf32>,
    return
  }
}

</mosaic_0001>

<bundles_post_ra>
// kernel: kmeans_forward.1
= control target key start
LH: loop header
LB: loop body
LE: loop exit
PB: predicated region body
PF: predicated region fallthrough
CT: control target
= control target key end

     0   :  { %7 = vsyncpa [#allocation3], 0  ;;  %v17_v2 = vlaneseq  ;;  %s473_s21 = smov 0   ;;  %s521_s0 = inlined_call_operand.vmem [shape: f32[33,128], index: 0, kind: input, shape index: {}]   ;;  %s522_s1 = inlined_call_operand.vmem [shape: f32[8,33], index: 1, kind: input, shape index: {}]   ;;  %s523_s2 = inlined_call_operand.hbm [shape: f32[8,32], index: 2, kind: output, shape index: {}]  }
   0x1   :  { %v442_v0 = vld [vmem:[%s521_s0] sm:$0xff]  ;;  %v447_v1 = vld [vmem:[%s521_s0 + $0x8] sm:$0xff]  ;;  %v452_v3 = vld [vmem:[%s521_s0 + $0x10] sm:$0xff] }
   0x2   :  { %v457_v4 = vld [vmem:[%s521_s0 + $0x18] sm:$0xff]  ;;  %v462_v5 = vld [vmem:[%s521_s0 + $0x20] sm:$0x1]  ;;  %v464_v6 = vshrl.u32 %v17_v2, 7  ;;  %v466_v7 = vand.u32 127, %v17_v2 }
   0x3   :  { %v21_v8 = vld [vmem:[%s522_s1] sm:$0xff]  }
   0x4 LB: > { %v343_v9 = vpack.c.bf16 %v447_v1, %v442_v0  ;;  %v417_v10 = vmov 0.0|0.0   ;;  %v418_v11 = vmov 0.0   ;;  %v346_v12 = vpack.c.bf16 %v457_v4, %v452_v3  ;;  %s27_s21 = sadd.s32 1, %s415_s21   ;;  %s415_s21 = sphi %s473_s21, %s27_s21   ;;  %v411_v8 = vphi %v21_v8, %v524_v8  }
   0x5   : > { %342 = vmatprep.subr.bf16.mxu0 %v417_v10  ;;  %348 = vmatprep.subr.mxu1 %v418_v11  ;;  %vm419_vm0 = vmmov 0   ;;  %v107_v13 = vmul.f32 %v411_v8, %v411_v8  ;;  %vm29_vm1 = vcmask 269312   ;;  %vm33_vm2 = vcmask 1040384   ;;  %p24_p0 = scmp.ge.s32.totalorder %s27_s21, 10  }
   0x6   : > { %344 = vmatpush3.bf16.msra.mxu0 %v343_v9  ;;  %322 = vmatprep.mubr.msk.f32.mxu0 %vm419_vm0, %v418_v11  ;;  %v420_v33 = vmov 1.0   ;;  %v421_v38 = vmov 32   ;;  %v422_v47 = vmov 0   ;;  %vm270_vm9 = vcmp.ge.s32.totalorder %v466_v7, 32  ;;  %s423_s0 = smov (%p24_p0), [#allocation2]  }
   0x7   : > { %345 = vmatprep.subr.bf16.mxu0 %v417_v10  ;;  %330 = vmatprep.mubr.msk.f32.mxu1 %vm419_vm0, %v418_v11  ;;  %v108_v14 = vsel %vm29_vm1, %v107_v13, 0.0  ;;  %vm272_vm11 = vcmask (%p24_p0), 261120   ;;  %s280_s1 = sshll.u32 (%p24_p0), %s423_s0, 4  ;;  %s281_s1 = int_to_ptr.vmem [resolvable:$true] %s280_s1 }
   0x8   : > { %109 = vadd.xlane.f32.xlu0 %v108_v14  ;;  %373 = vset.pattern.permute.xlu1 %v421_v38  ;;  %s377_s22 = scalar_lea.vmem (%p24_p0), %s281_s1, 128  ;;  %p382_p2 = scmp.lt.s32.totalorder (%p24_p0), %s281_s1, %s281_s1 }
   0x9   :  { %p378_p1 = scmp.ne.s32.totalorder (%p24_p0), %s281_s1, %s377_s22  ;;  %p383_p3 = scmp.lt.s32.totalorder (%p24_p0), %s377_s22, %s377_s22 }
   0xa   : > { %347 = vmatpush3.bf16.msra.mxu0 %v346_v12 }
   0xb   : > { %320 = vmatprep.subr.mxu0 %v418_v11  ;;  %p384_p4 = por (%p24_p0), %p383_p3, %p382_p2 }
   0xd   :  { %p385_p5 = pnand (%p24_p0), %p384_p4, %p378_p1 }
   0xe   : > { %321 = vmatpush3.msk.msra.mxu0 %vm33_vm2, %v462_v5 }
   0xf   : > { %323 = vmatmul.mubr.msk.f32.vlgmr.msra.gmra.mrb[0].mxu0 %vm29_vm1, %v411_v8  ;;  %325 = vmatprep.subr.mxu0 %v418_v11 }
  0x10   : > { %327 = vmatprep.mubr.msk.f32.mxu0 %vm419_vm0, %v418_v11 }
  0x95   : > { %v110_v15 = vpop.xlane.xlu0 %109 }
  0x96   : > { %v111_v16 = vmul.f32 0.5, %v110_v15 }
  0xe2   : > { %v103_v17 = vpop.f32.mrb[0].mxu0 }
  0xe3   : > { %v112_v18 = vsub.f32 %v111_v16, %v103_v17  ;;  %v324_v19 = vpop.f32.mrb[1].mxu0 }
  0xe5   : > { %v113_v20 = vrot.slane %v112_v18, 4 }
  0xe7   : > { %v114_v21 = vmin.f32 %v112_v18, %v113_v20 }
  0xe9   : > { %v115_v22 = vrot.slane %v114_v21, 2 }
  0xeb   : > { %v116_v23 = vmin.f32 %v114_v21, %v115_v22 }
  0xed   : > { %v117_v24 = vrot.slane %v116_v23, 1 }
  0xef   : > { %v118_v25 = vmin.f32 %v116_v23, %v117_v24 }
  0xf1   : > { %vm119_vm3 = vcmp.le.f32.partialorder %v112_v18, %v118_v25 }
  0xf2   : > { %v120_v26 = vsel %vm119_vm3, %v464_v6, 8 }
  0xf3   : > { %v121_v27 = vrot.slane %v120_v26, 4 }
  0xf5   : > { %vm122_vm4 = vcmp.lt.s32.totalorder %v120_v26, %v121_v27 }
  0xf6   : > { %v123_v28 = vsel %vm122_vm4, %v120_v26, %v121_v27 }
  0xf7   : > { %v124_v29 = vrot.slane %v123_v28, 2 }
  0xf9   : > { %vm125_vm5 = vcmp.lt.s32.totalorder %v123_v28, %v124_v29 }
  0xfa   : > { %v126_v30 = vsel %vm125_vm5, %v123_v28, %v124_v29 }
  0xfb   : > { %v127_v31 = vrot.slane %v126_v30, 1 }
  0xfd   : > { %vm128_vm6 = vcmp.lt.s32.totalorder %v126_v30, %v127_v31 }
  0xfe   : > { %v129_v32 = vsel %vm128_vm6, %v126_v30, %v127_v31 }
  0xff   : > { %vm130_vm7 = vcmp.eq.s32.totalorder %v464_v6, %v129_v32 }
 0x100   : > { %326 = vmatpush3.xpose.msk.msra.mxu0 %vm130_vm7, %v420_v33  ;;  %349 = vmatpush3.xpose.msk.msra.mxu1 %vm130_vm7, %v420_v33 }
 0x103   : > { %328 = vmatmul.mubr.f32.vlgmr.msra.gmra.mrb[2].mxu0 %v442_v0  ;;  %331 = vmatmul.mubr.f32.vlgmr.msra.gmra.mrb[0].mxu1 %v447_v1 }
 0x104   : > { %333 = vmatprep.mubr.msk.f32.mxu1 %vm419_vm0, %v418_v11 }
 0x107   : > { %334 = vmatmul.mubr.f32.gmra.mrb[2].mxu1 %v452_v3 }
 0x108   : > { %336 = vmatprep.mubr.msk.f32.mxu1 %vm419_vm0, %v418_v11 }
 0x10b   : > { %337 = vmatmul.mubr.f32.gmra.mrb[4].mxu1 %v457_v4 }
 0x10c   : > { %339 = vmatprep.mubr.msk.f32.mxu1 %vm419_vm0, %v418_v11 }
 0x10f   : > { %340 = vmatmul.mubr.f32.gmra.mrb[6].mxu1 %v462_v5 }
 0x1d6   : > { %v199_v34 = vpop.f32.mrb[2].mxu0  ;;  %v204_v35 = vpop.f32.mrb[0].mxu1 }
 0x1d7   : > { %223 = vxpose.xlu0.b32.start [1/5] (short) (narrow) %v199_v34, 8  ;;  %v329_v36 = vpop.f32.mrb[3].mxu0  ;;  %v332_v37 = vpop.f32.mrb[1].mxu1 }
 0x1da   : > { %v209_v39 = vpop.f32.mrb[2].mxu1 }
 0x1db   : > { %224 = vxpose.xlu0.b32.cont [2/5] (short) (narrow) %v204_v35, 8  ;;  %v335_v40 = vpop.f32.mrb[3].mxu1 }
 0x1de   : > { %v214_v41 = vpop.f32.mrb[4].mxu1 }
 0x1df   : > { %225 = vxpose.xlu0.b32.cont [3/5] (short) (narrow) %v209_v39, 8  ;;  %v338_v42 = vpop.f32.mrb[5].mxu1 }
 0x1e2   : > { %v219_v43 = vpop.f32.mrb[6].mxu1 }
 0x1e3   : > { %226 = vxpose.xlu0.b32.cont [4/5] (short) (narrow) %v214_v41, 8  ;;  %v341_v44 = vpop.f32.mrb[7].mxu1 }
 0x1e7   : > { %227 = vxpose.xlu0.b32.end [5/5] (short) (narrow) %v219_v43, 8 }
 0x210   : > { %374 = vset.pattern.permute.xlu0 %v421_v38 }
 0x257   : > { %v239_v45 = vpop.trf.xlu0 }
 0x258   : > { %v256_v46 = vmax.f32 %v239_v45, 1.0  ;;  %vm255_vm8 = vcmp.gt.f32.partialorder %v239_v45, 0.0 }
 0x259   : > { %v264_v48 = vsel %vm255_vm8, 1, %v422_v47 }
 0x25a   : > { %259 = vperm.xlu1 %373, %v256_v46  }
 0x25e   : > { %266 = vperm.xlu1 %373, %v264_v48  }
 0x2d9   : > { %v260_v49 = vpop.permute.xlu1 %259 }
 0x2da   : > { %375 = vrcp.f32 %v260_v49 }
 0x2dd   : > { %v267_v50 = vpop.permute.xlu1 %266 }
 0x2de   : > { %vm268_vm10 = vcmp.eq.s32.totalorder %v267_v50, 1 }
 0x2e3   :  { %26 = sbr.rel (!%p24_p0) target bundleno = 4 (0x4), region = 35 }
 0x2e4   : > { %v376_v51 = vpop.eup %375 }
 0x2e5   : > { %v263_v52 = vmul.f32 %v376_v51, %v239_v45 }
 0x2e7   : > { %v269_v53 = vsel %vm268_vm10, %v263_v52, %v411_v8 }
 0x2e8   : > { %v271_v54 = vsel %vm270_vm9, 0.0, %v269_v53  }
 0x2e9   : > { %v524_v8 = vmov %v271_v54  ;;  %273 = vst.msk [vmem:[#allocation2] sm:$0xff] (%p24_p0), %vm272_vm11, %v271_v54 }
 0x2ea   :  { %388 = shalt.err (!%p385_p5)
}
 0x2eb   :  { %s389_s25 = scalar_lea.hbm %s523_s2, 128 }
 0x2ec   :  { %p390_p6 = scmp.ne.s32.totalorder %s523_s2, %s389_s25  ;;  %p393_p7 = scmp.lt.u32.totalorder %s389_s25, %s523_s2 }
 0x2ee   :  { %p395_p8 = pnand %p393_p7, %p390_p6 }
 0x2f0   :  { %398 = shalt.err (!%p395_p8)
}
 0x2f1   :  { %283 = dma.vmem_to_hbm [thread:$0]  %s281_s1, 128, %s523_s2, [#allocation3]  }
 0x2f2   :  { %407 = dma.done.wait [#allocation3], 128  }
 0x2f3   :  { %408 = vsyncadd [#allocation3], 4294967168 }
 0x2f4   :  { %287 = vsyncpa [#allocation3], 1 }

</bundles_post_ra>
